<compile_context>
chip_gen: v6e
topology: v6e:2x2x1
jax: 0.10.0
libtpu: 0.0.40
codegen_flags: <defaults>
</compile_context>

<pallas_src>
import functools

import numpy as np
import jax
import jax.numpy as jnp
from jax import lax
from jax.experimental import pallas as pl
from jax.experimental.pallas import tpu as pltpu


def _round_up(a: int, m: int) -> int:
    return (a + m - 1) // m * m


def _cdiv(a: int, b: int) -> int:
    return -(-a // b)


def _batch_center_loss_kernel(
    rids_ref, cids_ref,                                          # scalar prefetch (SMEM)
    xr_ref, xc_ref, sqr_ref, sqc_ref, tr_ref, tc_ref, tri_ref,   # VMEM inputs
    o_ref,                                                       # (8,128) f32 per-shard output
    gram_ref, rowacc_ref,                                        # VMEM scratch
    *, ppc: int, num_pairs: int, inv_batch: float,
):
    s = pl.program_id(0)        # shard (parallel -> one per TensorCore on v7x)
    p = pl.program_id(1)        # block-pair index within this shard
    k = pl.program_id(2)        # feature-chunk index
    n_p = pl.num_programs(1)
    n_k = pl.num_programs(2)

    # New shard sweep: clear the per-row distance accumulator.
    @pl.when((p == 0) & (k == 0))
    def _():
        rowacc_ref[...] = jnp.zeros_like(rowacc_ref)

    # New block pair: clear the Gram accumulator.
    @pl.when(k == 0)
    def _():
        gram_ref[...] = jnp.zeros_like(gram_ref)

    # MXU Gram chunk: contract the feature axis of both operands (trans-B
    # matmul).  Operands stay in their storage dtype (bf16 by default, MXU
    # native); accumulation is f32.
    gram_ref[...] += lax.dot_general(
        xr_ref[...], xc_ref[...],
        dimension_numbers=(((1,), (1,)), ((), ())),
        preferred_element_type=jnp.float32,
    )

    # Epilogue on the last feature chunk of this block pair.
    @pl.when(k == n_k - 1)
    def _():
        gp = s * ppc + p                 # global pair index
        ri = rids_ref[gp]                # row-block index
        ci = cids_ref[gp]                # col-block index (ci >= ri)

        # ||a||^2 + ||b||^2 - 2 a.b  (norms precomputed in f32 by the wrapper).
        d2 = sqr_ref[...] + sqc_ref[...] - 2.0 * gram_ref[...]
        dist = jnp.sqrt(jnp.maximum(d2, 0.0))          # clamp fp cancellation

        # Same-label mask via (tb,1) vs (1,tb) broadcast (no transposes).
        same = tr_ref[...] == tc_ref[...]

        # Every visited block pair holds each unordered pair exactly once:
        # diagonal blocks keep their strict upper triangle (precomputed mask),
        # off-diagonal blocks (ci > ri) take all entries.  Weight is 1.
        pair_mask = jnp.where(ri == ci, tri_ref[...], 1.0)
        masked = jnp.where(same, dist, 0.0) * pair_mask

        # Lane reduce only here; the cross-sublane reduce is deferred.
        row_sums = jnp.sum(masked, axis=-1, keepdims=True)       # (tb, 1)
        valid = gp < num_pairs                                    # skip padded slots
        rowacc_ref[...] += jnp.where(valid, row_sums, 0.0)

    # Final step of this shard: sublane reduce, scale by 1/B, write partial.
    @pl.when((p == n_p - 1) & (k == n_k - 1))
    def _():
        total = jnp.sum(rowacc_ref[...], axis=0, keepdims=True)   # (1, 1)
        o_ref[...] = jnp.broadcast_to(total * inv_batch, o_ref.shape)


def _vmem_limit_bytes(tb: int, tk: int, x_itemsize: int) -> int:
    """Double-buffered VMEM budget for the chosen tiles, plus headroom."""
    x_bufs = 2 * 2 * tb * tk * x_itemsize           # xr + xc, 2 buffers each
    vec_bufs = 2 * 2 * (tb * 128 + 8 * tb) * 4       # sq / label row+col blocks
    tri_bufs = 2 * tb * tb * 4                       # resident triangle mask
    scratch = tb * tb * 4 + tb * 128 * 4             # Gram + row accumulators
    temps = 8 * tb * tb * 4                          # d2 / dist / mask temporaries
    need = x_bufs + vec_bufs + tri_bufs + scratch + temps + (4 << 20)
    try:
        cap = int(pltpu.get_tpu_info().vmem_capacity_bytes) * 85 // 100
    except Exception:
        cap = 56 << 20      # safe ceiling on v5e/v6e (128 MiB) and v7x (64 MiB)
    return max(min(need, cap), 32 << 20)


def batch_center_loss(x: jax.Array, target: jax.Array, *,
                      block_size: int = 512, k_block: int = 512,
                      gram_dtype=jnp.bfloat16) -> jax.Array:
    """x: (B, D) float features; target: (B,) int labels. Returns scalar loss."""
    B, D = x.shape
    assert block_size % 128 == 0, "block_size must be a multiple of 128"
    assert k_block > 0

    # Batch tile: one block for small batches, 128-aligned tiles otherwise.
    if B <= block_size:
        tb = _round_up(max(B, 8), 8)
    else:
        tb = block_size
    b_pad = _round_up(B, tb)
    nb = b_pad // tb
    pad_b = b_pad - B

    # Feature (K) tiling: bounds VMEM to O(tb*tk + tb^2) regardless of D.
    ksteps = _cdiv(D, k_block)
    if ksteps == 1:
        tk, d_pad = D, D                 # full-dim block, no lane padding needed
    else:
        tk = _round_up(_cdiv(D, ksteps), 128)
        d_pad = tk * ksteps
    pad_d = d_pad - D

    # Store x in the Gram dtype (bf16 default -> MXU-native, half the DMA).
    xq = x.astype(gram_dtype)
    if pad_b or pad_d:
        xq = jnp.pad(xq, ((0, pad_b), (0, pad_d)))

    # f32 squared norms of the (rounded) features, in row and column layouts,
    # so the kernel never transposes per step.
    xf = xq.astype(jnp.float32)
    sq = jnp.sum(xf * xf, axis=-1, keepdims=True)        # (b_pad, 1)
    sq_row = sq
    sq_col = sq.reshape(1, b_pad)

    # Labels; padded rows get distinct sentinels that cannot match real labels.
    tgt = target.astype(jnp.int32)
    if pad_b:
        sentinels = np.iinfo(np.int32).min + jnp.arange(pad_b, dtype=jnp.int32)
        tgt = jnp.concatenate([tgt, sentinels])
    t_row = tgt.reshape(b_pad, 1)
    t_col = tgt.reshape(1, b_pad)

    # Strict-upper-triangle mask for diagonal blocks (VMEM resident, fetched once).
    tri = (jnp.arange(tb)[None, :] > jnp.arange(tb)[:, None]).astype(jnp.float32)

    # Upper-triangular block-pair list (ci >= ri), split into contiguous
    # per-shard slices (preserves row-block reuse); padded slots skipped in-kernel.
    rows, cols = np.triu_indices(nb)
    num_pairs = int(rows.shape[0])
    num_shards = 2 if num_pairs >= 2 else 1     # v7x megacore; harmless on 1-TC chips
    ppc = _cdiv(num_pairs, num_shards)
    tot = num_shards * ppc
    rid = np.zeros((tot,), np.int32); rid[:num_pairs] = rows
    cid = np.zeros((tot,), np.int32); cid[:num_pairs] = cols
    row_ids = jnp.asarray(rid)
    col_ids = jnp.asarray(cid)

    kernel = functools.partial(_batch_center_loss_kernel,
                               ppc=ppc, num_pairs=num_pairs, inv_batch=1.0 / B)

    out = pl.pallas_call(
        kernel,
        out_shape=jax.ShapeDtypeStruct((num_shards * 8, 128), jnp.float32),
        grid_spec=pltpu.PrefetchScalarGridSpec(
            num_scalar_prefetch=2,
            grid=(num_shards, ppc, ksteps),
            in_specs=[
                pl.BlockSpec((tb, tk), lambda s, p, k, r, c: (r[s * ppc + p], k)),  # x rows
                pl.BlockSpec((tb, tk), lambda s, p, k, r, c: (c[s * ppc + p], k)),  # x cols
                pl.BlockSpec((tb, 1), lambda s, p, k, r, c: (r[s * ppc + p], 0)),   # row |x|^2
                pl.BlockSpec((1, tb), lambda s, p, k, r, c: (0, c[s * ppc + p])),   # col |x|^2
                pl.BlockSpec((tb, 1), lambda s, p, k, r, c: (r[s * ppc + p], 0)),   # row labels
                pl.BlockSpec((1, tb), lambda s, p, k, r, c: (0, c[s * ppc + p])),   # col labels
                pl.BlockSpec((tb, tb), lambda s, p, k, r, c: (0, 0)),               # tri mask
            ],
            out_specs=pl.BlockSpec((8, 128), lambda s, p, k, r, c: (s, 0)),
            scratch_shapes=[pltpu.VMEM((tb, tb), jnp.float32),   # Gram accumulator
                            pltpu.VMEM((tb, 1), jnp.float32)],   # row-sum accumulator
        ),
        compiler_params=pltpu.CompilerParams(
            dimension_semantics=("parallel", "arbitrary", "arbitrary"),
            vmem_limit_bytes=_vmem_limit_bytes(tb, tk, jnp.dtype(gram_dtype).itemsize),
        ),
    )(row_ids, col_ids, xq, xq, sq_row, sq_col, t_row, t_col, tri)

    partials = out.reshape(num_shards, 8, 128)[:, 0, 0]      # one partial per shard
    return jnp.sum(partials)


def _reference_loss(x, target):
    """Pure-JAX f32 reference mirroring the PyTorch per-class loop semantics."""
    x = x.astype(jnp.float32)
    B = x.shape[0]
    sq = jnp.sum(x * x, axis=-1, keepdims=True)
    d2 = jnp.maximum(sq + sq.T - 2.0 * (x @ x.T), 0.0)
    dist = jnp.sqrt(d2)
    same = target[:, None] == target[None, :]
    off_diag = ~jnp.eye(B, dtype=bool)
    return jnp.sum(jnp.where(same & off_diag, dist, 0.0)) / (2.0 * B)


if __name__ == "__main__":
    key = jax.random.PRNGKey(0)
    k1, k2, k3, k4, k5, k6 = jax.random.split(key, 6)

    # Test 1: tiny single-block case, exact f32 Gram path.
    B1, D1, C1 = 8, 32, 3
    x1 = jax.random.normal(k1, (B1, D1), dtype=jnp.float32)
    t1 = jax.random.randint(k2, (B1,), 0, C1, dtype=jnp.int32)
    loss1 = jax.block_until_ready(batch_center_loss(x1, t1, gram_dtype=jnp.float32))
    ref1 = jax.block_until_ready(_reference_loss(x1, t1))
    assert jnp.allclose(loss1, ref1, rtol=1e-4, atol=1e-4), (loss1, ref1)

    # Test 2: multi-block triangular tiling, 2-shard parallel axis, row padding.
    B2, D2, C2 = 160, 64, 5
    x2 = jax.random.normal(k3, (B2, D2), dtype=jnp.float32)
    t2 = jax.random.randint(k4, (B2,), 0, C2, dtype=jnp.int32)
    ref2 = jax.block_until_ready(_reference_loss(x2, t2))
    loss2_f32 = jax.block_until_ready(
        batch_center_loss(x2, t2, block_size=128, gram_dtype=jnp.float32))
    assert jnp.allclose(loss2_f32, ref2, rtol=1e-4, atol=1e-4), (loss2_f32, ref2)
    loss2_bf16 = jax.block_until_ready(batch_center_loss(x2, t2, block_size=128))
    assert jnp.allclose(loss2_bf16, ref2, rtol=5e-3, atol=1e-2), (loss2_bf16, ref2)

    # Test 3: K-axis (feature-chunk) Gram accumulation path, exact f32.
    B3, D3, C3 = 96, 160, 4
    x3 = jax.random.normal(k5, (B3, D3), dtype=jnp.float32)
    t3 = jax.random.randint(k6, (B3,), 0, C3, dtype=jnp.int32)
    loss3 = jax.block_until_ready(
        batch_center_loss(x3, t3, block_size=128, k_block=64, gram_dtype=jnp.float32))
    ref3 = jax.block_until_ready(_reference_loss(x3, t3))
    assert jnp.allclose(loss3, ref3, rtol=1e-4, atol=1e-4), (loss3, ref3)

    print("KERNEL_OK")
</pallas_src>

<mosaic_0001>
module attributes {stable_mosaic.version = 11 : i64} {
  func.func @_batch_center_loss_kernel(%arg0: i32, %arg1: i32, %arg2: i32, %arg3: memref<1xi32, #tpu.memory_space<smem>>, %arg4: memref<1xi32, #tpu.memory_space<smem>>, %arg5: memref<8x32xf32, #tpu.memory_space<vmem>>, %arg6: memref<8x32xf32, #tpu.memory_space<vmem>>, %arg7: memref<8x1xf32, #tpu.memory_space<vmem>>, %arg8: memref<1x8xf32, #tpu.memory_space<vmem>>, %arg9: memref<8x1xi32, #tpu.memory_space<vmem>>, %arg10: memref<1x8xi32, #tpu.memory_space<vmem>>, %arg11: memref<8x8xf32, #tpu.memory_space<vmem>>, %arg12: memref<8x128xf32, #tpu.memory_space<vmem>>, %arg13: memref<8x8xf32, #tpu.memory_space<vmem>>, %arg14: memref<8x1xf32, #tpu.memory_space<vmem>>) attributes {dimension_semantics = [#tpu.dimension_semantics<parallel>, #tpu.dimension_semantics<arbitrary>, #tpu.dimension_semantics<arbitrary>], iteration_bounds = array<i64: 1, 1, 1>, scalar_prefetch = 2 : i64, scratch_operands = 2 : i64, tpu.core_type = #tpu.core_type<tc>, window_params = [{transform_indices = @transform_0, window_bounds = array<i64: 8, 32>}, {transform_indices = @transform_1, window_bounds = array<i64: 8, 32>}, {transform_indices = @transform_2, window_bounds = array<i64: 8, 1>}, {transform_indices = @transform_3, window_bounds = array<i64: 1, 8>}, {transform_indices = @transform_4, window_bounds = array<i64: 8, 1>}, {transform_indices = @transform_5, window_bounds = array<i64: 1, 8>}, {pipeline_mode = #tpu.pipeline_mode<synchronous>, transform_indices = @transform_6, window_bounds = array<i64: 8, 8>}, {transform_indices = @transform_7, window_bounds = array<i64: 8, 128>}]} {
    %c0_i32 = arith.constant 0 : i32
    %0 = arith.cmpi eq, %arg1, %c0_i32 : i32
    %c0_i32_0 = arith.constant 0 : i32
    %1 = arith.cmpi eq, %arg2, %c0_i32_0 : i32
    %2 = arith.andi %0, %1 : i1
    %3 = arith.extui %2 : i1 to i32
    %c0_i32_1 = arith.constant 0 : i32
    %4 = arith.cmpi ne, %3, %c0_i32_1 : i32
    scf.if %4 {
      %cst_16 = arith.constant 0.000000e+00 : f32
      %22 = vector.broadcast %cst_16 : f32 to vector<8x1xf32>
      %c0_17 = arith.constant 0 : index
      %c0_18 = arith.constant 0 : index
      %23 = vector.load %arg14[%c0_17, %c0_18] : memref<8x1xf32, #tpu.memory_space<vmem>>, vector<8x1xf32>
      tpu.vector_store %arg14[%c0_17, %c0_18], %22 {strides = array<i32>} : memref<8x1xf32, #tpu.memory_space<vmem>>, vector<8x1xf32>,
    } else {
    }
    %c0_i32_2 = arith.constant 0 : i32
    %5 = arith.cmpi eq, %arg2, %c0_i32_2 : i32
    %6 = arith.extui %5 : i1 to i32
    %c0_i32_3 = arith.constant 0 : i32
    %7 = arith.cmpi ne, %6, %c0_i32_3 : i32
    scf.if %7 {
      %cst_16 = arith.constant 0.000000e+00 : f32
      %22 = vector.broadcast %cst_16 : f32 to vector<8x8xf32>
      %c0_17 = arith.constant 0 : index
      %c0_18 = arith.constant 0 : index
      %23 = vector.load %arg13[%c0_17, %c0_18] : memref<8x8xf32, #tpu.memory_space<vmem>>, vector<8x8xf32>
      tpu.vector_store %arg13[%c0_17, %c0_18], %22 {strides = array<i32>} : memref<8x8xf32, #tpu.memory_space<vmem>>, vector<8x8xf32>,
    } else {
    }
    %c0 = arith.constant 0 : index
    %c0_4 = arith.constant 0 : index
    %8 = vector.load %arg13[%c0, %c0_4] : memref<8x8xf32, #tpu.memory_space<vmem>>, vector<8x8xf32>
    %c0_5 = arith.constant 0 : index
    %c0_6 = arith.constant 0 : index
    %9 = vector.load %arg5[%c0_5, %c0_6] : memref<8x32xf32, #tpu.memory_space<vmem>>, vector<8x32xf32>
    %c0_7 = arith.constant 0 : index
    %c0_8 = arith.constant 0 : index
    %10 = vector.load %arg6[%c0_7, %c0_8] : memref<8x32xf32, #tpu.memory_space<vmem>>, vector<8x32xf32>
    %cst = arith.constant dense<0.000000e+00> : vector<8x8xf32>
    %11 = tpu.matmul %9, %10, %cst {dimension_numbers = #tpu.dot_dimension_numbers<[1], [1], [0], [0], [0, 0, 1, 0], [], []>} : vector<8x32xf32>, vector<8x32xf32>, vector<8x8xf32> -> vector<8x8xf32>
    %12 = arith.addf %8, %11 : vector<8x8xf32>
    %c0_9 = arith.constant 0 : index
    %c0_10 = arith.constant 0 : index
    %13 = vector.load %arg13[%c0_9, %c0_10] : memref<8x8xf32, #tpu.memory_space<vmem>>, vector<8x8xf32>
    tpu.vector_store %arg13[%c0_9, %c0_10], %12 {strides = array<i32>} : memref<8x8xf32, #tpu.memory_space<vmem>>, vector<8x8xf32>,
    %c0_i32_11 = arith.constant 0 : i32
    %14 = arith.cmpi eq, %arg2, %c0_i32_11 : i32
    %15 = arith.extui %14 : i1 to i32
    %c0_i32_12 = arith.constant 0 : i32
    %16 = arith.cmpi ne, %15, %c0_i32_12 : i32
    scf.if %16 {
      %c1_i32 = arith.constant 1 : i32
      %22 = arith.muli %arg0, %c1_i32 : i32
      %23 = arith.addi %22, %arg1 : i32
      %24 = arith.index_cast %23 : i32 to index
      %25 = memref.load %arg3[%24] : memref<1xi32, #tpu.memory_space<smem>>
      %26 = arith.index_cast %23 : i32 to index
      %27 = memref.load %arg4[%26] : memref<1xi32, #tpu.memory_space<smem>>
      %c0_16 = arith.constant 0 : index
      %c0_17 = arith.constant 0 : index
      %28 = vector.load %arg7[%c0_16, %c0_17] : memref<8x1xf32, #tpu.memory_space<vmem>>, vector<8x1xf32>
      %c0_18 = arith.constant 0 : index
      %c0_19 = arith.constant 0 : index
      %29 = vector.load %arg8[%c0_18, %c0_19] : memref<1x8xf32, #tpu.memory_space<vmem>>, vector<1x8xf32>
      %30 = vector.broadcast %28 : vector<8x1xf32> to vector<8x8xf32>
      %31 = vector.broadcast %29 : vector<1x8xf32> to vector<8x8xf32>
      %32 = arith.addf %30, %31 : vector<8x8xf32>
      %c0_20 = arith.constant 0 : index
      %c0_21 = arith.constant 0 : index
      %33 = vector.load %arg13[%c0_20, %c0_21] : memref<8x8xf32, #tpu.memory_space<vmem>>, vector<8x8xf32>
      %cst_22 = arith.constant 2.000000e+00 : f32
      %34 = vector.broadcast %cst_22 : f32 to vector<8x8xf32>
      %35 = arith.mulf %34, %33 : vector<8x8xf32>
      %36 = arith.subf %32, %35 : vector<8x8xf32>
      %cst_23 = arith.constant 0.000000e+00 : f32
      %37 = vector.broadcast %cst_23 : f32 to vector<8x8xf32>
      %38 = arith.maximumf %36, %37 : vector<8x8xf32>
      %39 = math.sqrt %38 : vector<8x8xf32>
      %c0_24 = arith.constant 0 : index
      %c0_25 = arith.constant 0 : index
      %40 = vector.load %arg9[%c0_24, %c0_25] : memref<8x1xi32, #tpu.memory_space<vmem>>, vector<8x1xi32>
      %c0_26 = arith.constant 0 : index
      %c0_27 = arith.constant 0 : index
      %41 = vector.load %arg10[%c0_26, %c0_27] : memref<1x8xi32, #tpu.memory_space<vmem>>, vector<1x8xi32>
      %42 = vector.broadcast %40 : vector<8x1xi32> to vector<8x8xi32>
      %43 = vector.broadcast %41 : vector<1x8xi32> to vector<8x8xi32>
      %44 = arith.cmpi eq, %42, %43 : vector<8x8xi32>
      %45 = arith.cmpi eq, %25, %27 : i32
      %c0_28 = arith.constant 0 : index
      %c0_29 = arith.constant 0 : index
      %46 = vector.load %arg11[%c0_28, %c0_29] : memref<8x8xf32, #tpu.memory_space<vmem>>, vector<8x8xf32>
      %cst_30 = arith.constant 1.000000e+00 : f32
      %47 = vector.broadcast %cst_30 : f32 to vector<8x8xf32>
      %48 = arith.select %45, %46, %47 : vector<8x8xf32>
      %cst_31 = arith.constant 0.000000e+00 : f32
      %49 = vector.broadcast %cst_31 : f32 to vector<8x8xf32>
      %50 = arith.select %44, %39, %49 : vector<8x8xi1>, vector<8x8xf32>
      %51 = arith.mulf %50, %48 : vector<8x8xf32>
      %cst_32 = arith.constant dense<0.000000e+00> : vector<8xf32>
      %52 = vector.multi_reduction <add>, %51, %cst_32 [1] : vector<8x8xf32> to vector<8xf32>
      %53 = vector.shape_cast %52 : vector<8xf32> to vector<8x1xf32>
      %c1_i32_33 = arith.constant 1 : i32
      %54 = arith.cmpi slt, %23, %c1_i32_33 : i32
      %c0_34 = arith.constant 0 : index
      %c0_35 = arith.constant 0 : index
      %55 = vector.load %arg14[%c0_34, %c0_35] : memref<8x1xf32, #tpu.memory_space<vmem>>, vector<8x1xf32>
      %cst_36 = arith.constant 0.000000e+00 : f32
      %56 = vector.broadcast %cst_36 : f32 to vector<8x1xf32>
      %57 = arith.select %54, %53, %56 : vector<8x1xf32>
      %58 = arith.addf %55, %57 : vector<8x1xf32>
      %c0_37 = arith.constant 0 : index
      %c0_38 = arith.constant 0 : index
      %59 = vector.load %arg14[%c0_37, %c0_38] : memref<8x1xf32, #tpu.memory_space<vmem>>, vector<8x1xf32>
      tpu.vector_store %arg14[%c0_37, %c0_38], %58 {strides = array<i32>} : memref<8x1xf32, #tpu.memory_space<vmem>>, vector<8x1xf32>,
    } else {
    }
    %c0_i32_13 = arith.constant 0 : i32
    %17 = arith.cmpi eq, %arg1, %c0_i32_13 : i32
    %c0_i32_14 = arith.constant 0 : i32
    %18 = arith.cmpi eq, %arg2, %c0_i32_14 : i32
    %19 = arith.andi %17, %18 : i1
    %20 = arith.extui %19 : i1 to i32
    %c0_i32_15 = arith.constant 0 : i32
    %21 = arith.cmpi ne, %20, %c0_i32_15 : i32
    scf.if %21 {
      %c0_16 = arith.constant 0 : index
      %c0_17 = arith.constant 0 : index
      %22 = vector.load %arg14[%c0_16, %c0_17] : memref<8x1xf32, #tpu.memory_space<vmem>>, vector<8x1xf32>
      %cst_18 = arith.constant dense<0.000000e+00> : vector<1xf32>
      %23 = vector.multi_reduction <add>, %22, %cst_18 [0] : vector<8x1xf32> to vector<1xf32>
      %24 = vector.shape_cast %23 : vector<1xf32> to vector<1x1xf32>
      %cst_19 = arith.constant 1.250000e-01 : f32
      %25 = vector.broadcast %cst_19 : f32 to vector<1x1xf32>
      %26 = arith.mulf %24, %25 : vector<1x1xf32>
      %27 = vector.shape_cast %26 : vector<1x1xf32> to vector<1x1xf32>
      %28 = vector.broadcast %27 : vector<1x1xf32> to vector<8x128xf32>
      %c0_20 = arith.constant 0 : index
      %c0_21 = arith.constant 0 : index
      %29 = vector.load %arg12[%c0_20, %c0_21] : memref<8x128xf32, #tpu.memory_space<vmem>>, vector<8x128xf32>
      tpu.vector_store %arg12[%c0_20, %c0_21], %28 {strides = array<i32>} : memref<8x128xf32, #tpu.memory_space<vmem>>, vector<8x128xf32>,
    } else {
    }
    return
  }
  func.func @transform_0(%arg0: i32, %arg1: i32, %arg2: i32, %arg3: memref<1xi32, #tpu.memory_space<smem>>, %arg4: memref<1xi32, #tpu.memory_space<smem>>) -> (i32, i32) {
    %c1_i32 = arith.constant 1 : i32
    %0 = arith.muli %arg0, %c1_i32 : i32
    %1 = arith.addi %0, %arg1 : i32
    %2 = arith.index_cast %1 : i32 to index
    %3 = memref.load %arg3[%2] : memref<1xi32, #tpu.memory_space<smem>>
    %c0_i32 = arith.constant 0 : i32
    return %3, %arg2 : i32, i32
  }
  func.func @transform_1(%arg0: i32, %arg1: i32, %arg2: i32, %arg3: memref<1xi32, #tpu.memory_space<smem>>, %arg4: memref<1xi32, #tpu.memory_space<smem>>) -> (i32, i32) {
    %c1_i32 = arith.constant 1 : i32
    %0 = arith.muli %arg0, %c1_i32 : i32
    %1 = arith.addi %0, %arg1 : i32
    %2 = arith.index_cast %1 : i32 to index
    %3 = memref.load %arg4[%2] : memref<1xi32, #tpu.memory_space<smem>>
    %c0_i32 = arith.constant 0 : i32
    return %3, %arg2 : i32, i32
  }
  func.func @transform_2(%arg0: i32, %arg1: i32, %arg2: i32, %arg3: memref<1xi32, #tpu.memory_space<smem>>, %arg4: memref<1xi32, #tpu.memory_space<smem>>) -> (i32, i32) {
    %c1_i32 = arith.constant 1 : i32
    %0 = arith.muli %arg0, %c1_i32 : i32
    %1 = arith.addi %0, %arg1 : i32
    %2 = arith.index_cast %1 : i32 to index
    %3 = memref.load %arg3[%2] : memref<1xi32, #tpu.memory_space<smem>>
    %c0_i32 = arith.constant 0 : i32
    %c0_i32_0 = arith.constant 0 : i32
    return %3, %c0_i32 : i32, i32
  }
  func.func @transform_3(%arg0: i32, %arg1: i32, %arg2: i32, %arg3: memref<1xi32, #tpu.memory_space<smem>>, %arg4: memref<1xi32, #tpu.memory_space<smem>>) -> (i32, i32) {
    %c1_i32 = arith.constant 1 : i32
    %0 = arith.muli %arg0, %c1_i32 : i32
    %1 = arith.addi %0, %arg1 : i32
    %2 = arith.index_cast %1 : i32 to index
    %3 = memref.load %arg4[%2] : memref<1xi32, #tpu.memory_space<smem>>
    %c0_i32 = arith.constant 0 : i32
    %c0_i32_0 = arith.constant 0 : i32
    return %c0_i32, %3 : i32, i32
  }
  func.func @transform_4(%arg0: i32, %arg1: i32, %arg2: i32, %arg3: memref<1xi32, #tpu.memory_space<smem>>, %arg4: memref<1xi32, #tpu.memory_space<smem>>) -> (i32, i32) {
    %c1_i32 = arith.constant 1 : i32
    %0 = arith.muli %arg0, %c1_i32 : i32
    %1 = arith.addi %0, %arg1 : i32
    %2 = arith.index_cast %1 : i32 to index
    %3 = memref.load %arg3[%2] : memref<1xi32, #tpu.memory_space<smem>>
    %c0_i32 = arith.constant 0 : i32
    %c0_i32_0 = arith.constant 0 : i32
    return %3, %c0_i32 : i32, i32
  }
  func.func @transform_5(%arg0: i32, %arg1: i32, %arg2: i32, %arg3: memref<1xi32, #tpu.memory_space<smem>>, %arg4: memref<1xi32, #tpu.memory_space<smem>>) -> (i32, i32) {
    %c1_i32 = arith.constant 1 : i32
    %0 = arith.muli %arg0, %c1_i32 : i32
    %1 = arith.addi %0, %arg1 : i32
    %2 = arith.index_cast %1 : i32 to index
    %3 = memref.load %arg4[%2] : memref<1xi32, #tpu.memory_space<smem>>
    %c0_i32 = arith.constant 0 : i32
    %c0_i32_0 = arith.constant 0 : i32
    return %c0_i32, %3 : i32, i32
  }
  func.func @transform_6(%arg0: i32, %arg1: i32, %arg2: i32, %arg3: memref<1xi32, #tpu.memory_space<smem>>, %arg4: memref<1xi32, #tpu.memory_space<smem>>) -> (i32, i32) {
    %c0_i32 = arith.constant 0 : i32
    %c0_i32_0 = arith.constant 0 : i32
    %c0_i32_1 = arith.constant 0 : i32
    return %c0_i32, %c0_i32_0 : i32, i32
  }
  func.func @transform_7(%arg0: i32, %arg1: i32, %arg2: i32, %arg3: memref<1xi32, #tpu.memory_space<smem>>, %arg4: memref<1xi32, #tpu.memory_space<smem>>) -> (i32, i32) {
    %c0_i32 = arith.constant 0 : i32
    %c0_i32_0 = arith.constant 0 : i32
    return %arg0, %c0_i32 : i32, i32
  }
}

</mosaic_0001>

<bundles_post_ra>
// kernel: tpu_custom_call.1
= control target key start
LH: loop header
LB: loop body
LE: loop exit
PB: predicated region body
PF: predicated region fallthrough
CT: control target
= control target key end

     0   :  { %vm163_vm0 = vcmask 7168   ;;  %v421_v0 = vmov 0.0   ;;  %vm422_vm1 = vmmov 0   ;;  %vm168_vm2 = vcmask 64512   ;;  %s528_s0 = inlined_call_operand.<no memory space> [shape: s32[1], index: 0, kind: input, shape index: {}]   ;;  %s529_s1 = inlined_call_operand.<no memory space> [shape: s32[1], index: 1, kind: input, shape index: {}]   ;;  %s530_s2 = inlined_call_operand.vmem [shape: f32[8,32], index: 2, kind: input, shape index: {}]   ;;  %s531_s3 = inlined_call_operand.vmem [shape: f32[8,32], index: 3, kind: input, shape index: {}]   ;;  %s532_s4 = inlined_call_operand.vmem [shape: f32[8,1], index: 4, kind: input, shape index: {}]   ;;  %s533_s5 = inlined_call_operand.vmem [shape: f32[1,8], index: 5, kind: input, shape index: {}]   ;;  %s534_s6 = inlined_call_operand.vmem [shape: s32[8,1], index: 6, kind: input, shape index: {}]   ;;  %s535_s7 = inlined_call_operand.vmem [shape: s32[1,8], index: 7, kind: input, shape index: {}]   ;;  %s536_s8 = inlined_call_operand.vmem [shape: f32[8,8], index: 8, kind: input, shape index: {}]   ;;  %s537_s9 = inlined_call_operand.hbm [shape: f32[8,128], index: 9, kind: output, shape index: {}]  }
   0x1   :  { %p121_p0 = scmp.lt.s32.totalorder %s529_s1, 0  ;;  %p113_p1 = scmp.lt.s32.totalorder %s528_s0, 0  ;;  %164 = vst.msk [vmem:[#allocation3] sm:$0xff] %vm163_vm0, %v421_v0  ;;  %386 = vmatprep.subr.mxu0 %v421_v0  ;;  %388 = vmatprep.mubr.msk.f32.mxu0 %vm422_vm1, %v421_v0 }
   0x2   :  { %16 = vsyncpa [#allocation8], 0  ;;  %v423_v1 = vmov 0   ;;  %169 = vst.msk [vmem:[#allocation2] sm:$0xff] %vm168_vm2, %v421_v0  ;;  %vm173_vm3 = vcmask 261120   ;;  %p294_p2 = scmp.eq.s32.totalorder %s528_s0, %s529_s1  ;;  %v295_v19 = vld [vmem:[%s536_s8] sm:$0xff] }
   0x3   :  { %s485_s15 = scalar_select %p121_p0, %s529_s1, 0  ;;  %395 = vset.pattern.permute.xlu0 %v423_v1  ;;  %396 = vset.pattern.permute.xlu1 %v423_v1 }
   0x4   :  { %s114_s18 = scalar_select %p113_p1, %s528_s0, 0 }
   0x5   :  { %s377_s19 = sshll.u32 %s485_s15, 3  ;;  %s424_s0 = smov [#allocation7]  }
   0x6   :  { %s124_s22 = scalar_lea.vmem %s531_s3, %s377_s19  ;;  %s376_s23 = sshll.u32 %s114_s18, 3 }
   0x7   :  { %v172_v2 = vld [vmem:[%s124_s22] sm:$0xff]  ;;  %s116_s26 = scalar_lea.vmem %s530_s2, %s376_s23  ;;  %s132_s29 = scalar_lea.vmem %s532_s4, %s376_s23 }
   0x8   :  { %387 = vmatpush3.xpose.msk.msra.mxu0 %vm173_vm3, %v172_v2  ;;  %v171_v3 = vld [vmem:[%s116_s26] sm:$0xff]  ;;  %s147_s11 = scalar_lea.vmem %s534_s6, %s376_s23  ;;  %s139_s4 = scalar_lea.vmem %s533_s5, %s485_s15  ;;  %v306_v30 = vld [vmem:[#allocation3] sm:$0xff] }
   0x9   :  { %v259_v4 = vld [vmem:[%s132_s29] sm:$0xff]  ;;  %s296_s16 = scalar_select %p294_p2, 1, 0 }
   0xa   :  { %263 = vperm.xlu0 %395, %v259_v4   ;;  %v284_v5 = vld [vmem:[%s147_s11] sm:$0xff]  ;;  %s154_s5 = scalar_lea.vmem %s535_s7, %s485_s15  ;;  %s338_s1 = sshll.u32 %s424_s0, 4  ;;  %s339_s1 = int_to_ptr.vmem [resolvable:$true] %s338_s1 }
   0xb   :  { %389 = vmatmul.mubr.msk.f32.vlgmr.msra.gmra.mxu0 %vm173_vm3, %v171_v3  ;;  %v170_v6 = vld [vmem:[#allocation2] sm:$0xff]  ;;  %v297_v17 = vstv %s296_s16  ;;  %s399_s7 = scalar_lea.vmem %s339_s1, 128  ;;  %p404_p4 = scmp.lt.s32.totalorder %s339_s1, %s339_s1 }
   0xc   :  { %v382_v10 = vld [vmem:[%s139_s4] ss:$0 sm:$0xff]  ;;  %vm298_vm4 = vcmp.eq.s32.totalorder %v297_v17, 1  ;;  %p400_p3 = scmp.ne.s32.totalorder %s339_s1, %s399_s7  ;;  %p405_p5 = scmp.lt.s32.totalorder %s399_s7, %s399_s7 }
   0xd   :  { %v383_v20 = vld [vmem:[%s154_s5] ss:$0 sm:$0xff]  ;;  %v299_v25 = vsel %vm298_vm4, %v295_v19, 1.0 }
   0xe   :  { %287 = vperm.xlu0 %395, %v284_v5   ;;  %p406_p6 = por %p405_p5, %p404_p4 }
  0x10   :  { %p407_p7 = pnand %p406_p6, %p400_p3 }
  0x85   :  { %v264_v11 = vpop.permute.xlu0 %263 }
  0x86   :  { %v272_v12 = vadd.f32 %v382_v10, %v264_v11 }
  0x89   :  { %v288_v21 = vpop.permute.xlu0 %287 }
  0x8a   :  { %vm293_vm7 = vcmp.eq.s32.totalorder %v288_v21, %v383_v20 }
  0xcb   :  { %v246_v7 = vpop.f32.mrf.mxu0 }
  0xcc   :  { %v250_v8 = vadd.f32 %v246_v7, %v170_v6 }
  0xcd   :  { %v390_v9 = vpop.f32.mrf.mxu0 }
  0xce   :  { %252 = vst.msk [vmem:[#allocation2] sm:$0xff] %vm168_vm2, %v250_v8 }
  0xd5   :  { %v273_v13 = vld [vmem:[#allocation2] sm:$0xff] }
  0xd6   :  { %v274_v14 = vmul.f32 2.0, %v273_v13 }
  0xd8   :  { %v275_v15 = vsub.f32 %v272_v12, %v274_v14 }
  0xda   :  { %v276_v16 = vmax.f32 %v275_v15, 0.0 }
  0xdc   :  { %397 = vrsqrt.f32 %v276_v16  ;;  %vm279_vm5 = vcmp.eq.f32.partialorder %v276_v16, inf  ;;  %v282_v23 = vand.u32 2147483648, %v276_v16  ;;  %vm281_vm6 = vcmp.eq.f32.partialorder %v276_v16, 0.0 }
  0xe9   :  { %v398_v18 = vpop.eup %397 }
  0xea   :  { %v278_v22 = vmul.f32 %v398_v18, %v276_v16 }
  0xec   :  { %v280_v24 = vsel %vm279_vm5, %v276_v16, %v278_v22 }
  0xed   :  { %v283_v26 = vsel %vm281_vm6, %v282_v23, %v280_v24 }
  0xee   :  { %v300_v27 = vsel %vm293_vm7, %v283_v26, 0.0 }
  0xef   :  { %v301_v28 = vmul.f32 %v300_v27, %v299_v25 }
  0xf1   :  { %v302_v29 = vsel %vm168_vm2, %v301_v28, 0.0 }
  0xf2   :  { %303 = vadd.xlane.f32.xlu1 %v302_v29 }
 0x17b   :  { %v304_v31 = vpop.xlane.xlu1 %303 }
 0x17c   :  { %v311_v32 = vadd.f32 %v306_v30, %v304_v31 }
 0x17e   :  { %313 = vst.msk [vmem:[#allocation3] sm:$0xff] %vm163_vm0, %v311_v32 }
 0x185   :  { %v316_v33 = vld [vmem:[#allocation3] sm:$0xff] }
 0x186   :  { %v318_v34 = vsel %vm163_vm0, %v316_v33, 0.0 }
 0x187   :  { %v319_v35 = vrot.slane %v318_v34, 4 }
 0x189   :  { %v320_v36 = vadd.f32 %v319_v35, %v318_v34 }
 0x18b   :  { %v321_v37 = vrot.slane %v320_v36, 2 }
 0x18d   :  { %v322_v38 = vadd.f32 %v321_v37, %v320_v36 }
 0x18f   :  { %v323_v39 = vrot.slane %v322_v38, 1 }
 0x191   :  { %v324_v40 = vadd.f32 %v323_v39, %v322_v38 }
 0x193   :  { %v325_v41 = vmul.f32 0.125, %v324_v40 }
 0x195   :  { %328 = vperm.xlu1 %396, %v325_v41  }
 0x210   :  { %v329_v42 = vpop.permute.xlu1 %328 }
 0x211   :  { %331 = vst [vmem:[#allocation7] sm:$0xff] %v329_v42 }
 0x212   :  { %410 = shalt.err (!%p407_p7)
}
 0x213   :  { %341 = dma.vmem_to_hbm [thread:$0]  %s339_s1, 128, %s537_s9, [#allocation8]  }
 0x214   :  { %419 = dma.done.wait [#allocation8], 128  }
 0x215   :  { %420 = vsyncadd [#allocation8], 4294967168 }
 0x216   :  { %345 = vsyncpa [#allocation8], 1 }

</bundles_post_ra>
